<compile_context>
chip_gen: v5e
topology: v5e:2x2
jax: 0.10.0
libtpu: 0.0.40
codegen_flags: <defaults>
</compile_context>

<pallas_src>
import functools

import jax
import jax.numpy as jnp
from jax.experimental import pallas as pl
from jax.experimental.pallas import tpu as pltpu

EPS = 1e-5          # nn.LayerNorm default
SUBLANE = 8


# ------------------------------ kernels ------------------------------------


def _normalize(x_ref, inv_d):
    """(x - mean) * rsqrt(var + eps) for a (TM, D) tile, computed in f32.
    One-pass moments; var clamped at 0 to avoid cancellation-induced NaNs."""
    xf = x_ref[...].astype(jnp.float32)
    s = jnp.sum(xf, axis=-1, keepdims=True)
    sq = jnp.sum(xf * xf, axis=-1, keepdims=True)
    mean = s * inv_d
    var = jnp.maximum(sq * inv_d - mean * mean, 0.0)
    inv = jax.lax.rsqrt(var + EPS)           # EUP slot
    return (xf - mean) * inv


def _fused_kernel_single(xa_ref, g_ref, b_ref, w_ref, bias_ref, o_ref, *, inv_d):
    # xa: (TM, D) tile; g/b/bias: (1, D) resident; w: (D, D) resident (bf16).
    g = g_ref[...].astype(jnp.float32)
    b = b_ref[...].astype(jnp.float32)
    bias = bias_ref[...].astype(jnp.float32)
    h = _normalize(xa_ref, inv_d) * g + b
    acc = jnp.dot(h.astype(w_ref.dtype), w_ref[...],
                  preferred_element_type=jnp.float32)
    o_ref[...] = (acc + bias).astype(o_ref.dtype)


def _fused_kernel_dual(xa_ref, xb_ref, g_ref, b_ref, w_ref, bias_ref, o_ref, *, inv_d):
    g = g_ref[...].astype(jnp.float32)
    b = b_ref[...].astype(jnp.float32)
    bias = bias_ref[...].astype(jnp.float32)
    # norm(a) + norm(b) = (hat_a + hat_b) * g + 2*b  (affine factored out once)
    h = (_normalize(xa_ref, inv_d) + _normalize(xb_ref, inv_d)) * g + 2.0 * b
    acc = jnp.dot(h.astype(w_ref.dtype), w_ref[...],
                  preferred_element_type=jnp.float32)
    o_ref[...] = (acc + bias).astype(o_ref.dtype)


# ------------------------------ wrappers ------------------------------------


def _round_up(n, m):
    return ((n + m - 1) // m) * m


def _vmem_limit_bytes():
    """Generation-aware VMEM limit: 3/4 of physical capacity.
    v7x (64 MiB) -> 48 MiB;  v5e/v6e (128 MiB) -> 96 MiB."""
    try:
        cap = pltpu.get_tpu_info().vmem_capacity_bytes
    except Exception:
        cap = 64 * 1024 * 1024
    return int(min((cap * 3) // 4, 112 * 1024 * 1024))


def _choose_tm(rows, d, n_streams, w_itemsize, vmem_budget):
    """Row-tile size. Resident: single-buffered bf16 weight + LN params/bias.
    Per-row: double-buffered input stream(s) + output tile. Cap 1024 for small D.
    Small row counts are split into >= 2 grid steps (v7x megacore)."""
    resident = d * d * w_itemsize + 3 * d * 4
    per_row = 2 * (n_streams + 1) * d * 4
    avail = max(vmem_budget - resident, SUBLANE * per_row)
    tm_cap = max(SUBLANE, (avail // per_row) // SUBLANE * SUBLANE)
    tm_cap = min(tm_cap, 1024 if d <= 512 else 512)
    rows8 = _round_up(rows, SUBLANE)
    if rows8 <= tm_cap:
        # at least 2 grid steps so the second TensorCore (v7x) is not idle
        tm = max(SUBLANE, _round_up(pl.cdiv(rows8, 2), SUBLANE))
    else:
        tm = tm_cap
    return int(tm)


@jax.jit
def prenorm_forward(params, x_A, x_B=None):
    """Mirrors PreNorm.forward:
        if x_B is None: fn(norm(x_A))
        else:           fn(norm(x_A), norm(x_B))
    with fn = deterministic Linear(dim, dim); the two-input form sums the two
    normalized streams before the linear. Fully fused into one pallas_call,
    no host-side padding or slicing of the activations."""
    orig_shape = x_A.shape
    d = orig_shape[-1]
    xa2 = x_A.reshape(-1, d)
    r = xa2.shape[0]
    n_streams = 1 if x_B is None else 2

    # bf16 weight for the MXU (LayerNorm math stays f32). gamma/beta/bias tiny, f32.
    w = params["fn_w"].astype(jnp.bfloat16)
    g = params["ln_gamma"].reshape(1, d).astype(jnp.float32)
    b = params["ln_beta"].reshape(1, d).astype(jnp.float32)
    bias = params["fn_b"].reshape(1, d).astype(jnp.float32)

    vmem_limit = _vmem_limit_bytes()
    tm = _choose_tm(r, d, n_streams, w.dtype.itemsize, vmem_limit)
    grid = (pl.cdiv(r, tm),)

    # x/out: tiled rows, full feature dim (block dim == array dim is legal for
    # any D; lane-dense automatically when D % 128 == 0).
    row_spec = pl.BlockSpec((tm, d), lambda i: (i, 0))
    # grid-invariant operands: single-buffered (double-buffering them only costs VMEM)
    vec_spec = pl.BlockSpec((1, d), lambda i: (0, 0), pipeline_mode=pl.Buffered(1))
    w_spec = pl.BlockSpec((d, d), lambda i: (0, 0), pipeline_mode=pl.Buffered(1))

    cost = pl.CostEstimate(
        flops=2 * r * d * d + n_streams * 8 * r * d,
        transcendentals=n_streams * r,
        bytes_accessed=(n_streams + 1) * r * d * 4
        + d * d * w.dtype.itemsize
        + 3 * d * 4,
    )
    cparams = pltpu.CompilerParams(
        dimension_semantics=("parallel",),      # megacore sharding on v7x
        vmem_limit_bytes=vmem_limit,
    )

    if x_B is None:
        kernel = functools.partial(_fused_kernel_single, inv_d=1.0 / d)
        in_specs = [row_spec, vec_spec, vec_spec, w_spec, vec_spec]
        args = (xa2, g, b, w, bias)
    else:
        kernel = functools.partial(_fused_kernel_dual, inv_d=1.0 / d)
        in_specs = [row_spec, row_spec, vec_spec, vec_spec, w_spec, vec_spec]
        args = (xa2, x_B.reshape(-1, d), g, b, w, bias)

    out = pl.pallas_call(
        kernel,
        out_shape=jax.ShapeDtypeStruct((r, d), x_A.dtype),
        grid=grid,
        in_specs=in_specs,
        out_specs=row_spec,
        compiler_params=cparams,
        cost_estimate=cost,
    )(*args)

    # TODO(synk): for very large D (> ~2900 in bf16 on v7x) add N (and K) grid
    # axes with an f32 accumulator scratch instead of a fully resident weight.
    return out.reshape(orig_shape)


# ------------------------------ reference -----------------------------------


def _ref_layernorm(x, g, b):
    mean = jnp.mean(x, axis=-1, keepdims=True)
    var = jnp.mean((x - mean) ** 2, axis=-1, keepdims=True)
    return (x - mean) / jnp.sqrt(var + EPS) * g + b


def _ref_forward(params, x_A, x_B=None):
    g, b = params["ln_gamma"], params["ln_beta"]
    n_a = _ref_layernorm(x_A, g, b)
    h = n_a if x_B is None else n_a + _ref_layernorm(x_B, g, b)
    return h @ params["fn_w"] + params["fn_b"]


# ------------------------------ main ----------------------------------------

if __name__ == "__main__":
    key = jax.random.PRNGKey(0)
    B, N, D = 2, 8, 32  # batch, tokens, feature dim

    k1, k2, k3, k4 = jax.random.split(key, 4)
    x_A = jax.random.normal(k1, (B, N, D), dtype=jnp.float32)
    x_B = jax.random.normal(k2, (B, N, D), dtype=jnp.float32)

    params = {
        # nn.LayerNorm(dim) default init: weight=1, bias=0
        "ln_gamma": jnp.ones((D,), dtype=jnp.float32),
        "ln_beta": jnp.zeros((D,), dtype=jnp.float32),
        # deterministic `fn`: Linear(dim, dim)
        "fn_w": jax.random.normal(k3, (D, D), dtype=jnp.float32) * 0.05,
        "fn_b": jax.random.normal(k4, (D,), dtype=jnp.float32) * 0.05,
    }

    # Branch 1: x_B is None
    out1 = jax.block_until_ready(prenorm_forward(params, x_A, None))
    ref1 = _ref_forward(params, x_A, None)

    # Branch 2: x_B provided
    out2 = jax.block_until_ready(prenorm_forward(params, x_A, x_B))
    ref2 = _ref_forward(params, x_A, x_B)

    assert out1.shape == (B, N, D) and out2.shape == (B, N, D)
    # tolerance accounts for the bf16 MXU matmul (LayerNorm itself is f32)
    assert jnp.allclose(out1, ref1, atol=5e-2, rtol=5e-2)
    assert jnp.allclose(out2, ref2, atol=5e-2, rtol=5e-2)

    print("KERNEL_OK")
</pallas_src>

<mosaic_0001>
module attributes {stable_mosaic.version = 11 : i64} {
  func.func @_fused_kernel_single(%arg0: i32, %arg1: memref<8x32xf32, #tpu.memory_space<vmem>>, %arg2: memref<1x32xf32, #tpu.memory_space<vmem>>, %arg3: memref<1x32xf32, #tpu.memory_space<vmem>>, %arg4: memref<32x32xbf16, #tpu.memory_space<vmem>>, %arg5: memref<1x32xf32, #tpu.memory_space<vmem>>, %arg6: memref<8x32xf32, #tpu.memory_space<vmem>>) attributes {dimension_semantics = [#tpu.dimension_semantics<parallel>], iteration_bounds = array<i64: 2>, scalar_prefetch = 0 : i64, scratch_operands = 0 : i64, tpu.core_type = #tpu.core_type<tc>, window_params = [{transform_indices = @transform_0, window_bounds = array<i64: 8, 32>}, {pipeline_mode = #tpu.pipeline_mode<synchronous>, transform_indices = @transform_1, window_bounds = array<i64: 1, 32>}, {pipeline_mode = #tpu.pipeline_mode<synchronous>, transform_indices = @transform_2, window_bounds = array<i64: 1, 32>}, {pipeline_mode = #tpu.pipeline_mode<synchronous>, transform_indices = @transform_3, window_bounds = array<i64: 32, 32>}, {pipeline_mode = #tpu.pipeline_mode<synchronous>, transform_indices = @transform_4, window_bounds = array<i64: 1, 32>}, {transform_indices = @transform_5, window_bounds = array<i64: 8, 32>}]} {
    %c0 = arith.constant 0 : index
    %c0_0 = arith.constant 0 : index
    %0 = vector.load %arg2[%c0, %c0_0] : memref<1x32xf32, #tpu.memory_space<vmem>>, vector<1x32xf32>
    %c0_1 = arith.constant 0 : index
    %c0_2 = arith.constant 0 : index
    %1 = vector.load %arg3[%c0_1, %c0_2] : memref<1x32xf32, #tpu.memory_space<vmem>>, vector<1x32xf32>
    %c0_3 = arith.constant 0 : index
    %c0_4 = arith.constant 0 : index
    %2 = vector.load %arg5[%c0_3, %c0_4] : memref<1x32xf32, #tpu.memory_space<vmem>>, vector<1x32xf32>
    %c0_5 = arith.constant 0 : index
    %c0_6 = arith.constant 0 : index
    %3 = vector.load %arg1[%c0_5, %c0_6] : memref<8x32xf32, #tpu.memory_space<vmem>>, vector<8x32xf32>
    %cst = arith.constant dense<0.000000e+00> : vector<8xf32>
    %4 = vector.multi_reduction <add>, %3, %cst [1] : vector<8x32xf32> to vector<8xf32>
    %5 = vector.shape_cast %4 : vector<8xf32> to vector<8x1xf32>
    %6 = arith.mulf %3, %3 : vector<8x32xf32>
    %cst_7 = arith.constant dense<0.000000e+00> : vector<8xf32>
    %7 = vector.multi_reduction <add>, %6, %cst_7 [1] : vector<8x32xf32> to vector<8xf32>
    %8 = vector.shape_cast %7 : vector<8xf32> to vector<8x1xf32>
    %cst_8 = arith.constant 3.125000e-02 : f32
    %9 = vector.broadcast %cst_8 : f32 to vector<8x1xf32>
    %10 = arith.mulf %5, %9 : vector<8x1xf32>
    %cst_9 = arith.constant 3.125000e-02 : f32
    %11 = vector.broadcast %cst_9 : f32 to vector<8x1xf32>
    %12 = arith.mulf %8, %11 : vector<8x1xf32>
    %13 = arith.mulf %10, %10 : vector<8x1xf32>
    %14 = arith.subf %12, %13 : vector<8x1xf32>
    %cst_10 = arith.constant 0.000000e+00 : f32
    %15 = vector.broadcast %cst_10 : f32 to vector<8x1xf32>
    %16 = arith.maximumf %14, %15 : vector<8x1xf32>
    %cst_11 = arith.constant 9.99999974E-6 : f32
    %17 = vector.broadcast %cst_11 : f32 to vector<8x1xf32>
    %18 = arith.addf %16, %17 : vector<8x1xf32>
    %19 = math.rsqrt %18 : vector<8x1xf32>
    %20 = vector.broadcast %10 : vector<8x1xf32> to vector<8x32xf32>
    %21 = arith.subf %3, %20 : vector<8x32xf32>
    %22 = vector.broadcast %19 : vector<8x1xf32> to vector<8x32xf32>
    %23 = arith.mulf %21, %22 : vector<8x32xf32>
    %24 = vector.broadcast %0 : vector<1x32xf32> to vector<8x32xf32>
    %25 = arith.mulf %23, %24 : vector<8x32xf32>
    %26 = vector.broadcast %1 : vector<1x32xf32> to vector<8x32xf32>
    %27 = arith.addf %25, %26 : vector<8x32xf32>
    %28 = arith.truncf %27 : vector<8x32xf32> to vector<8x32xbf16>
    %c0_12 = arith.constant 0 : index
    %c0_13 = arith.constant 0 : index
    %29 = vector.load %arg4[%c0_12, %c0_13] : memref<32x32xbf16, #tpu.memory_space<vmem>>, vector<32x32xbf16>
    %cst_14 = arith.constant dense<0.000000e+00> : vector<8x32xf32>
    %30 = tpu.matmul %28, %29, %cst_14 {dimension_numbers = #tpu.dot_dimension_numbers<[1], [0], [0], [1], [0, 0, 1, 1], [], []>} : vector<8x32xbf16>, vector<32x32xbf16>, vector<8x32xf32> -> vector<8x32xf32>
    %31 = vector.broadcast %2 : vector<1x32xf32> to vector<8x32xf32>
    %32 = arith.addf %30, %31 : vector<8x32xf32>
    %c0_15 = arith.constant 0 : index
    %c0_16 = arith.constant 0 : index
    %33 = vector.load %arg6[%c0_15, %c0_16] : memref<8x32xf32, #tpu.memory_space<vmem>>, vector<8x32xf32>
    tpu.vector_store %arg6[%c0_15, %c0_16], %32 {strides = array<i32>} : memref<8x32xf32, #tpu.memory_space<vmem>>, vector<8x32xf32>,
    return
  }
  func.func @transform_0(%arg0: i32) -> (i32, i32) {
    %c0_i32 = arith.constant 0 : i32
    %c0_i32_0 = arith.constant 0 : i32
    return %arg0, %c0_i32 : i32, i32
  }
  func.func @transform_1(%arg0: i32) -> (i32, i32) {
    %c0_i32 = arith.constant 0 : i32
    %c0_i32_0 = arith.constant 0 : i32
    %c0_i32_1 = arith.constant 0 : i32
    return %c0_i32, %c0_i32_0 : i32, i32
  }
  func.func @transform_2(%arg0: i32) -> (i32, i32) {
    %c0_i32 = arith.constant 0 : i32
    %c0_i32_0 = arith.constant 0 : i32
    %c0_i32_1 = arith.constant 0 : i32
    return %c0_i32, %c0_i32_0 : i32, i32
  }
  func.func @transform_3(%arg0: i32) -> (i32, i32) {
    %c0_i32 = arith.constant 0 : i32
    %c0_i32_0 = arith.constant 0 : i32
    %c0_i32_1 = arith.constant 0 : i32
    return %c0_i32, %c0_i32_0 : i32, i32
  }
  func.func @transform_4(%arg0: i32) -> (i32, i32) {
    %c0_i32 = arith.constant 0 : i32
    %c0_i32_0 = arith.constant 0 : i32
    %c0_i32_1 = arith.constant 0 : i32
    return %c0_i32, %c0_i32_0 : i32, i32
  }
  func.func @transform_5(%arg0: i32) -> (i32, i32) {
    %c0_i32 = arith.constant 0 : i32
    %c0_i32_0 = arith.constant 0 : i32
    return %arg0, %c0_i32 : i32, i32
  }
}

</mosaic_0001>

<bundles_post_ra>
// kernel: prenorm_forward.1
= control target key start
LH: loop header
LB: loop body
LE: loop exit
PB: predicated region body
PF: predicated region fallthrough
CT: control target
= control target key end

     0   :  { %10 = vsyncpa [#allocation3], 0  ;;  %s634_s0 = inlined_call_operand.vmem [shape: f32[16,32], index: 0, kind: input, shape index: {}]   ;;  %s635_s1 = inlined_call_operand.vmem [shape: f32[1,32], index: 1, kind: input, shape index: {}]   ;;  %s636_s2 = inlined_call_operand.vmem [shape: f32[1,32], index: 2, kind: input, shape index: {}]   ;;  %s637_s3 = inlined_call_operand.vmem [shape: bf16[32,32], index: 3, kind: input, shape index: {}]   ;;  %s638_s4 = inlined_call_operand.vmem [shape: f32[1,32], index: 4, kind: input, shape index: {}]   ;;  %s639_s5 = inlined_call_operand.hbm [shape: f32[16,32], index: 5, kind: output, shape index: {}]  }
   0x1   :  { %12 = vsyncpa [#allocation3 + $0x1], 0  ;;  %s530_s18 = smov 0   ;;  %s532_s19 = smov 0  }
   0x2   :  { %s534_s20 = smov 0   ;;  %s536_s21 = smov 0  }
   0x3 LB: > { %s551_s22 = sadd.s32 4294967295, %s498_s21   ;;  %s371_s23 = sadd.s32 4294967294, %s498_s21   ;;  %s498_s21 = sphi %s536_s21, %s645_s21   ;;  %s494_s20 = sphi %s534_s20, %s644_s20   ;;  %s490_s19 = sphi %s532_s19, %s643_s19   ;;  %s486_s18 = sphi %s530_s18, %s642_s18  }
   0x4   : > { %s555_s24 = sadd.s32 1, %s498_s21   ;;  %s135_s25 = sadd.s32 1, %s494_s20 }
   0x5   : > { %s132_s26 = ssub.s32 %s498_s21, %s555_s24  ;;  %p145_p0 = scmp.ne.s32.totalorder %s494_s20, %s490_s19 }
   0x6   : > { %p133_p1 = scmp.eq.s32.totalorder %s132_s26, 0  ;;  %p146_p2 = scmp.eq.s32.totalorder %s551_s22, 1 }
   0x7   : > { %p151_p3 = scmp.ne.s32.totalorder %s490_s19, %s486_s18  ;;  %p152_p4 = scmp.eq.s32.totalorder %s371_s23, 1 }
   0x8   : > { %s566_s27 = scalar_select %p133_p1, %s494_s20, %s135_s25  }
   0x9   : > { %p568_p5 = por %p146_p2, %p145_p0  ;;  %p572_p6 = por %p152_p4, %p151_p3 }
   0xa   : > { %p374_p7 = scmp.ge.s32.totalorder %s498_s21, 1  ;;  %p189_p8 = scmp.lt.s32.totalorder %s498_s21, 3 }
   0xc   : > { %p190_p9 = pnand %p374_p7, %p189_p8 }
   0xd   : > { %p216_p10 = scmp.lt.s32.totalorder (!%p190_p9), %s551_s22, 1  ;;  %s213_s23 = sand.u32 (!%p190_p9), 1, %s490_s19  }
   0xe   : > { %193 = sbr.rel (%p190_p9) target bundleno = 317 (0x13d), region = 40  ;;  %s387_s25 = sshll.u32 (!%p190_p9), %s551_s22, 3 }
   0xf   : > { %s375_s26 = sshll.u32 (!%p190_p9), %s213_s23, 3  ;;  %s307_s7 = scalar_lea.hbm (!%p190_p9), %s639_s5, %s387_s25 }
  0x10   : > { %s215_s10 = scalar_lea.vmem (!%p190_p9), [#allocation2], %s375_s26  ;;  %s311_s12 = sshll.u32 (!%p190_p9), %s307_s7, 4  ;;  %s312_s12 = int_to_ptr.hbm [resolvable:$true] %s311_s12 }
  0x11   : > { %s309_s11 = sshll.u32 (!%p190_p9), %s215_s10, 4  ;;  %s450_s13 = sshra.s32 (!%p190_p9), %s312_s12, 4  ;;  %s310_s11 = int_to_ptr.vmem [resolvable:$true] %s309_s11  ;;  %s451_s13 = int_to_ptr.hbm [resolvable:$true] %s450_s13 }
  0x12   : > { %s452_s14 = scalar_lea.hbm (!%p190_p9), %s451_s13, 8  ;;  %s456_s17 = scalar_lea.hbm (!%p190_p9), %s639_s5, 16 }
  0x13   : > { %s217_s30 = scalar_select %p216_p10, %s551_s22, 1  ;;  %vm225_vm0 = vcmask 261120   ;;  %v391_v5 = vld [vmem:[%s637_s3 + $0x8] sm:$0xff]  ;;  %v390_v6 = vld [vmem:[%s637_s3] sm:$0xff] }
  0x14   : > { %288 = vmatpush.bf16.msra.mxu0 %v391_v5  ;;  %v431_v21 = vld [vmem:[%s635_s1] ss:$0 sm:$0xff]  ;;  %s297_s22 = scalar_lea.sflag [#allocation3], %s213_s23  ;;  %p453_p11 = scmp.ne.s32.totalorder %s451_s13, %s452_s14 }
  0x15   : > { %s376_s6 = sshll.u32 %s217_s30, 3  ;;  %v432_v24 = vld [vmem:[%s636_s2] ss:$0 sm:$0xff]  ;;  %p457_p0 = scmp.lt.s32.totalorder %s451_s13, %s639_s5 }
  0x16   : > { %s219_s9 = scalar_lea.vmem %s634_s0, %s376_s6  ;;  %v433_v28 = vld [vmem:[%s638_s4] ss:$0 sm:$0xff]  ;;  %p454_p12 = pnand %p453_p11, %p568_p5 }
  0x17   : > { %v224_v0 = vld [vmem:[%s219_s9] sm:$0xff]  ;;  %p458_p1 = scmp.lt.s32.totalorder %s456_s17, %s452_s14 }
  0x18   : > { %v226_v1 = vsel %vm225_vm0, %v224_v0, 0.0  ;;  %v229_v2 = vmul.f32 %v224_v0, %v224_v0  ;;  %289 = vmatpush.bf16.msra.mxu0 %v390_v6  ;;  %p455_p13 = pneg %p454_p12 }
  0x19   : > { %227 = vadd.xlane.f32.xlu0 %v226_v1  ;;  %p459_p2 = por %p458_p1, %p457_p0 }
  0x1a   : > { %v230_v3 = vsel %vm225_vm0, %v229_v2, 0.0 }
  0x1b   : > { %p460_p3 = pnand %p459_p2, %p455_p13 }
  0x21   : > { %231 = vadd.xlane.f32.xlu0 %v230_v3 }
  0x8c   : > { %v228_v4 = vpop.xlane.xlu0 %227 }
  0x8d   : > { %v233_v7 = vmul.f32 0.03125, %v228_v4 }
  0x8f   : > { %v235_v9 = vmul.f32 %v233_v7, %v233_v7  ;;  %v249_v20 = vsub.f32 %v224_v0, %v233_v7 }
  0x94   : > { %v232_v8 = vpop.xlane.xlu0 %231 }
  0x95   : > { %v234_v10 = vmul.f32 0.03125, %v232_v8 }
  0x97   : > { %v236_v11 = vsub.f32 %v234_v10, %v235_v9 }
  0x99   : > { %v237_v12 = vmax.f32 %v236_v11, 0.0 }
  0x9b   : > { %v238_v13 = vadd.f32 1e-05, %v237_v12 }
  0x9d   : > { %434 = vrsqrt.f32 %v238_v13  ;;  %vm245_vm2 = vweird.f32 %v238_v13 }
  0xa3   : > { %v435_v14 = vpop.eup %434 }
  0xa4   : > { %v240_v15 = vmul.f32 %v435_v14, %v238_v13  ;;  %vm246_vm1 = vweird.f32 %v435_v14 }
  0xa5   : > { %vm247_vm3 = vmor %vm245_vm2, %vm246_vm1 }
  0xa6   : > { %v241_v16 = vmul.f32 %v435_v14, %v240_v15 }
  0xa8   : > { %v242_v17 = vmul.f32 0.5, %v241_v16 }
  0xaa   : > { %v243_v18 = vsub.f32 1.5, %v242_v17 }
  0xac   : > { %v244_v19 = vmul.f32 %v435_v14, %v243_v18 }
  0xae   : > { %v248_v22 = vsel %vm247_vm3, %v435_v14, %v244_v19 }
  0xaf   : > { %v250_v23 = vmul.f32 %v249_v20, %v248_v22 }
  0xb1   : > { %v254_v25 = vmul.f32 %v431_v21, %v250_v23 }
  0xb3   : > { %v258_v26 = vadd.f32 %v432_v24, %v254_v25 }
  0xb5   : > { %v259_v27 = vpack.c.bf16 %v258_v26, %v258_v26 }
  0xb7   : > { %385 = vmatmul.msk.bf16.vlgmr.msra.gmra.mxu0 %vm225_vm0, %v259_v27 }
 0x134   : > { %v291_v29 = vpop.f32.mrf.mxu0 }
 0x135   : > { %v292_v30 = vadd.f32 %v433_v28, %v291_v29 }
 0x137   : > { %295 = vst.msk [vmem:[%s215_s10] sm:$0xff] %vm225_vm0, %v292_v30 }
 0x138   : > { %463 = shalt.err (!%p460_p3)
}
 0x139   : > { %392 = dma.vmem_to_hbm [thread:$0]  (%p568_p5), %s310_s11, 128, %s312_s12, %s297_s22  }
 0x13c   : > { %v293_v31 = vpop.f32.mrf.mxu0 }
 0x13d PF: > { %p398_p4 = scmp.ge.s32.totalorder %s498_s21, 2  ;;  %s323_s23 = sand.u32 1, %s486_s18  }
 0x13e   : > { %s324_s30 = scalar_lea.sflag [#allocation3], %s323_s23 }
 0x13f   : > { %p395_p7 = pnand %p398_p4, %p572_p6 }
 0x141   : > { %p396_p8 = pneg %p395_p7 }
 0x143   : > { %481 = dma.done.wait (%p396_p8), %s324_s30, 128  }
 0x144   : > { %483 = vsyncadd (%p396_p8), %s324_s30, 4294967168  ;;  %p15_p9 = scmp.ge.s32.totalorder %s555_s24, 4   ;;  %s642_s18 = smov %s490_s19 }
 0x145   : > { %s643_s19 = smov %s494_s20  ;;  %s644_s20 = smov %s566_s27 }
 0x146   : > { %s645_s21 = smov %s555_s24  ;;  %17 = sbr.rel (!%p15_p9) target bundleno = 3 (0x3), region = 75 }
 0x14b   :  { %330 = vsyncpa [#allocation3], 1 }
 0x14c   :  { %332 = vsyncpa [#allocation3 + $0x1], 1 }

</bundles_post_ra>
